<compile_context>
chip_gen: v7x
topology: tpu7x:2x2x1
jax: 0.10.0
libtpu: 0.0.40
codegen_flags: <defaults>
</compile_context>

<pallas_src>
import functools

import jax
import jax.numpy as jnp
from jax.experimental import pallas as pl
from jax.experimental.pallas import tpu as pltpu


# --------------------------------------------------------------------------
# Kernels
# --------------------------------------------------------------------------
def _hinge_costs(scores_ref, d1m_ref, d2m_ref, *, tm, n, cdt, mask_diag):
    """Hinge costs for the current row strip.

    d1m/d2m already carry the margin folded in (diag - margin), so each cost is
    one subtract + one relu per element.  The diagonal (max_violation path) and
    padded remainder rows are handled with a single -inf pre-mask on the scores
    (relu(-inf - finite) == 0), so no per-cost selects are needed.
    """
    s = scores_ref[...].astype(cdt)                   # (tm, n)
    d1m = d1m_ref[...].astype(cdt)                    # (tm, 1)  diag - margin (rows)
    d2m = d2m_ref[...].astype(cdt)                    # (1, n)   diag - margin (cols)

    has_rem = (n % tm) != 0
    mask = None
    if has_rem or mask_diag:
        row_off = pl.program_id(0) * tm
        global_row = jax.lax.broadcasted_iota(jnp.int32, (tm, 1), 0) + row_off
        if has_rem:
            valid = global_row < n                    # (tm, 1)
            # Padded rows of the diag slice are uninitialized (possibly NaN);
            # sanitize so (-inf - d1m) stays -inf.  Per-row op: negligible.
            d1m = jnp.where(valid, d1m, 0.0)
        if mask_diag:
            col_ids = jax.lax.broadcasted_iota(jnp.int32, (tm, n), 1)
            mask = col_ids == global_row              # (tm, n) "eye"
            if has_rem:
                mask = jnp.logical_or(mask, jnp.logical_not(valid))
        else:
            mask = jnp.logical_not(valid)             # (tm, 1); where() broadcasts
    if mask is not None:
        s = jnp.where(mask, float("-inf"), s)

    cost_s = jnp.maximum(s - d1m, 0.0)                # caption retrieval
    cost_im = jnp.maximum(s - d2m, 0.0)               # image retrieval
    return cost_s, cost_im


def _sum_kernel(scores_ref, d1m_ref, d2m_ref, partial_ref, *, tm, n, cdt):
    cost_s, cost_im = _hinge_costs(scores_ref, d1m_ref, d2m_ref,
                                   tm=tm, n=n, cdt=cdt, mask_diag=False)
    # Lane-dense (1, 1, N) per-column partial sums; f32 accumulation.
    col = jnp.sum(cost_s + cost_im, axis=0, keepdims=True, dtype=jnp.float32)
    partial_ref[...] = col.reshape(1, 1, n)


def _max_violation_kernel(scores_ref, d1m_ref, d2m_ref, colmax_ref, rowsum_ref,
                          *, tm, n, cdt):
    cost_s, cost_im = _hinge_costs(scores_ref, d1m_ref, d2m_ref,
                                   tm=tm, n=n, cdt=cdt, mask_diag=True)
    # Column maxes span all row strips -> lane-dense per-tile partial (f32 at
    # the reduction; hinge math stays in the compute dtype).
    colmax = jnp.max(cost_im.astype(jnp.float32), axis=0, keepdims=True)
    colmax_ref[...] = colmax.reshape(1, 1, n)
    # Row maxes are complete within a strip (it spans all columns); reduce the
    # hardest-negative sum to one scalar per strip (padded rows contribute 0).
    rmax = jnp.max(cost_s.astype(jnp.float32), axis=1, keepdims=True)  # (tm, 1)
    rowsum_ref[...] = jnp.sum(rmax, keepdims=True).reshape(1, 1, 1)


# --------------------------------------------------------------------------
# Tiling / VMEM sizing
# --------------------------------------------------------------------------
def _pick_tile_rows(n, in_dtype, cdt):
    in_b = jnp.dtype(in_dtype).itemsize
    c_b = jnp.dtype(cdt).itemsize
    sub = 16 if min(in_b, c_b) < 4 else 8      # bf16 strips: 16-row sublane packing
    if n < 64:
        return n                               # tiny: dispatch-bound, one strip
    # Live VMEM per strip ~ double-buffered input + ~4 compute-dtype temporaries.
    per_row = n * (2 * in_b + 4 * c_b)
    budget = 12 * 1024 * 1024                  # safe under v7x's 64 MiB physical VMEM
    tm = max(sub, min(512, (budget // per_row) // sub * sub))
    half = -(-n // 2)                          # ceil(n / 2)
    half = -(-half // sub) * sub               # rounded up to sublane granule
    tm = min(tm, half)                         # >= 2 strips: both v7x TCs get work
    return int(max(sub, min(tm, n)))


def _vmem_limit_bytes(tm, n, in_dtype, cdt):
    in_b = jnp.dtype(in_dtype).itemsize
    c_b = jnp.dtype(cdt).itemsize
    strip = tm * n
    est = (2 * strip * in_b            # double-buffered score strip
           + 4 * strip * c_b           # in-kernel temporaries (s / mask / costs)
           + 4 * (tm + n) * c_b        # diag blocks (double-buffered)
           + 4 * (n + 2) * 4)          # output blocks
    # Raise v5e's 16 MiB scoped default; stays below every generation's physical.
    return int(min(48 * 2 ** 20, max(32 * 2 ** 20, 2 * est)))


# --------------------------------------------------------------------------
# Wrapper
# --------------------------------------------------------------------------
def contrastive_loss(scores, *, margin=0.0, max_violation=False,
                     cost_style="sum", tile_rows=None, compute_dtype=None):
    """Pallas equivalent of ContrastiveLoss.forward (returns a scalar)."""
    if cost_style not in ("sum", "mean"):
        raise ValueError(f"unknown cost_style: {cost_style}")
    if scores.ndim != 2 or scores.shape[0] != scores.shape[1]:
        raise ValueError(f"scores must be square, got {scores.shape}")
    n = scores.shape[0]
    margin = float(margin)

    # Hinge math in bf16 for bf16 inputs (2x VPU throughput on v6e/v7x; v5e
    # upcasts internally, harmless).  Override with compute_dtype=jnp.float32.
    if compute_dtype is None:
        compute_dtype = jnp.bfloat16 if scores.dtype == jnp.bfloat16 else jnp.float32
    cdt = jnp.dtype(compute_dtype)

    if tile_rows is None:
        tile_rows = _pick_tile_rows(n, scores.dtype, cdt)
    tm = int(min(int(tile_rows), n))
    num_tiles = (n + tm - 1) // tm

    # Matched-pair scores: one O(N) gather (never a second full-matrix pass).
    # Margin is folded in here so the kernel does a single subtract + relu.
    idx = jnp.arange(n)
    diag = scores[idx, idx]
    dshift = diag.astype(cdt) - jnp.asarray(margin, cdt)      # diag - margin
    d1m = dshift.reshape(n, 1)
    d2m = dshift.reshape(1, n)

    in_specs = [
        pl.BlockSpec((tm, n), lambda i: (i, 0)),    # row strip of scores
        pl.BlockSpec((tm, 1), lambda i: (i, 0)),    # matching (diag - margin) rows
        pl.BlockSpec((1, n), lambda i: (0, 0)),     # full (diag - margin) row
    ]
    compiler_params = pltpu.CompilerParams(
        dimension_semantics=("parallel",),          # v7x: 2 TCs split the strips
        vmem_limit_bytes=_vmem_limit_bytes(tm, n, scores.dtype, cdt))

    # TODO(synk): for production (many small score matrices) add a leading
    # batch grid axis so one pallas_call amortizes dispatch overhead.

    if max_violation:
        kernel = functools.partial(_max_violation_kernel, tm=tm, n=n, cdt=cdt)
        grid_spec = pltpu.PrefetchScalarGridSpec(
            num_scalar_prefetch=0, grid=(num_tiles,),
            in_specs=in_specs,
            out_specs=(pl.BlockSpec((1, 1, n), lambda i: (i, 0, 0)),
                       pl.BlockSpec((1, 1, 1), lambda i: (i, 0, 0))))
        colmax, rowsum = pl.pallas_call(
            kernel,
            out_shape=(jax.ShapeDtypeStruct((num_tiles, 1, n), jnp.float32),
                       jax.ShapeDtypeStruct((num_tiles, 1, 1), jnp.float32)),
            grid_spec=grid_spec,
            compiler_params=compiler_params)(scores, d1m, d2m)
        sum_s = jnp.sum(rowsum)                                 # hardest / row
        sum_im = jnp.sum(jnp.max(colmax[:, 0, :], axis=0))      # hardest / col
        total = sum_s + sum_im
        return total / n if cost_style == "mean" else total

    kernel = functools.partial(_sum_kernel, tm=tm, n=n, cdt=cdt)
    grid_spec = pltpu.PrefetchScalarGridSpec(
        num_scalar_prefetch=0, grid=(num_tiles,),
        in_specs=in_specs,
        out_specs=pl.BlockSpec((1, 1, n), lambda i: (i, 0, 0)))
    partial = pl.pallas_call(
        kernel,
        out_shape=jax.ShapeDtypeStruct((num_tiles, 1, n), jnp.float32),
        grid_spec=grid_spec,
        compiler_params=compiler_params)(scores, d1m, d2m)
    total = jnp.sum(partial)
    # The kernel does not mask the diagonal; subtract its contribution.  Each
    # diagonal element contributes relu(diag - (diag - margin)) to BOTH cost
    # matrices; computed here with the exact same dtype/ops as the kernel.
    diag_corr = 2.0 * jnp.sum(
        jnp.maximum(diag.astype(cdt) - dshift, 0.0).astype(jnp.float32))
    total = total - diag_corr
    return total / (n * n) if cost_style == "mean" else total


# --------------------------------------------------------------------------
# Pure-JAX reference (mirrors the PyTorch semantics)
# --------------------------------------------------------------------------
def _reference_loss(scores, margin=0.0, max_violation=False, cost_style="sum"):
    n = scores.shape[0]
    diag = jnp.diagonal(scores)
    d1 = diag[:, None]
    d2 = diag[None, :]
    eye = jnp.eye(n, dtype=bool)
    cost_s = jnp.where(eye, 0.0, jnp.maximum(margin + scores - d1, 0.0))
    cost_im = jnp.where(eye, 0.0, jnp.maximum(margin + scores - d2, 0.0))
    if max_violation:
        cost_s = cost_s.max(axis=1)
        cost_im = cost_im.max(axis=0)
    if cost_style == "sum":
        return cost_s.sum() + cost_im.sum()
    return cost_s.mean() + cost_im.mean()


if __name__ == "__main__":
    key = jax.random.PRNGKey(0)
    k1, k2, k3 = jax.random.split(key, 3)

    # Case 1: default config (margin=0, no max_violation, 'sum'), single strip.
    n1 = 8
    s1 = jax.random.normal(k1, (n1, n1), dtype=jnp.float32)
    out1 = jax.block_until_ready(contrastive_loss(s1))
    ref1 = _reference_loss(s1)
    assert jnp.allclose(out1, ref1, rtol=1e-5, atol=1e-5), (out1, ref1)

    # Case 2: multi-strip grid (3 strips of 8 rows), max_violation + 'mean'.
    n2 = 24
    s2 = jax.random.normal(k2, (n2, n2), dtype=jnp.float32)
    out2 = jax.block_until_ready(
        contrastive_loss(s2, margin=0.2, max_violation=True,
                         cost_style="mean", tile_rows=8))
    ref2 = _reference_loss(s2, margin=0.2, max_violation=True,
                           cost_style="mean")
    assert jnp.allclose(out2, ref2, rtol=1e-5, atol=1e-5), (out2, ref2)

    # Case 2b: sum path with margin > 0 and a remainder strip (24 rows, 16-row
    # strips) -> exercises the wrapper-side diagonal correction.
    out2b = jax.block_until_ready(
        contrastive_loss(s2, margin=0.2, cost_style="sum", tile_rows=16))
    ref2b = _reference_loss(s2, margin=0.2, cost_style="sum")
    assert jnp.allclose(out2b, ref2b, rtol=1e-5, atol=1e-5), (out2b, ref2b)

    # Case 3: bf16 wire, f32 hinge math (explicit override), remainder strip.
    n3 = 20
    s3 = jax.random.normal(k3, (n3, n3), dtype=jnp.float32).astype(jnp.bfloat16)
    out3 = jax.block_until_ready(
        contrastive_loss(s3, margin=0.1, cost_style="sum", tile_rows=8,
                         compute_dtype=jnp.float32))
    ref3 = _reference_loss(s3.astype(jnp.float32), margin=0.1, cost_style="sum")
    assert jnp.allclose(out3, ref3, rtol=1e-4, atol=1e-4), (out3, ref3)

    # Case 4: bf16 wire, bf16 hinge math (v6e/v7x fast path), max_violation.
    out4 = jax.block_until_ready(
        contrastive_loss(s3, margin=0.1, max_violation=True,
                         cost_style="mean", tile_rows=8))
    ref4 = _reference_loss(s3.astype(jnp.float32), margin=0.1,
                           max_violation=True, cost_style="mean")
    assert jnp.allclose(out4, ref4, rtol=2e-2, atol=2e-2), (out4, ref4)

    # Case 5: bf16 wire, bf16 hinge math, sum path + diag correction.
    out5 = jax.block_until_ready(
        contrastive_loss(s3, margin=0.1, cost_style="sum", tile_rows=8))
    ref5 = _reference_loss(s3.astype(jnp.float32), margin=0.1, cost_style="sum")
    assert jnp.allclose(out5, ref5, rtol=2e-2, atol=2e-2), (out5, ref5)

    print("KERNEL_OK")
</pallas_src>

<mosaic_0001>
module attributes {stable_mosaic.version = 11 : i64} {
  func.func @_sum_kernel(%arg0: i32, %arg1: memref<8x8xf32, #tpu.memory_space<vmem>>, %arg2: memref<8x1xf32, #tpu.memory_space<vmem>>, %arg3: memref<1x8xf32, #tpu.memory_space<vmem>>, %arg4: memref<1x1x8xf32, #tpu.memory_space<vmem>>) attributes {dimension_semantics = [#tpu.dimension_semantics<parallel>], iteration_bounds = array<i64: 1>, scalar_prefetch = 0 : i64, scratch_operands = 0 : i64, tpu.core_type = #tpu.core_type<tc>, window_params = [{transform_indices = @transform_0, window_bounds = array<i64: 8, 8>}, {transform_indices = @transform_1, window_bounds = array<i64: 8, 1>}, {pipeline_mode = #tpu.pipeline_mode<synchronous>, transform_indices = @transform_2, window_bounds = array<i64: 1, 8>}, {transform_indices = @transform_3, window_bounds = array<i64: 1, 1, 8>}]} {
    %c0 = arith.constant 0 : index
    %c0_0 = arith.constant 0 : index
    %0 = vector.load %arg1[%c0, %c0_0] : memref<8x8xf32, #tpu.memory_space<vmem>>, vector<8x8xf32>
    %c0_1 = arith.constant 0 : index
    %c0_2 = arith.constant 0 : index
    %1 = vector.load %arg2[%c0_1, %c0_2] : memref<8x1xf32, #tpu.memory_space<vmem>>, vector<8x1xf32>
    %c0_3 = arith.constant 0 : index
    %c0_4 = arith.constant 0 : index
    %2 = vector.load %arg3[%c0_3, %c0_4] : memref<1x8xf32, #tpu.memory_space<vmem>>, vector<1x8xf32>
    %3 = vector.broadcast %1 : vector<8x1xf32> to vector<8x8xf32>
    %4 = arith.subf %0, %3 : vector<8x8xf32>
    %cst = arith.constant 0.000000e+00 : f32
    %5 = vector.broadcast %cst : f32 to vector<8x8xf32>
    %6 = arith.maximumf %4, %5 : vector<8x8xf32>
    %7 = vector.broadcast %2 : vector<1x8xf32> to vector<8x8xf32>
    %8 = arith.subf %0, %7 : vector<8x8xf32>
    %cst_5 = arith.constant 0.000000e+00 : f32
    %9 = vector.broadcast %cst_5 : f32 to vector<8x8xf32>
    %10 = arith.maximumf %8, %9 : vector<8x8xf32>
    %11 = arith.addf %6, %10 : vector<8x8xf32>
    %cst_6 = arith.constant dense<0.000000e+00> : vector<8xf32>
    %12 = vector.multi_reduction <add>, %11, %cst_6 [0] : vector<8x8xf32> to vector<8xf32>
    %13 = vector.shape_cast %12 : vector<8xf32> to vector<1x8xf32>
    %14 = vector.shape_cast %13 : vector<1x8xf32> to vector<1x1x8xf32>
    %c0_7 = arith.constant 0 : index
    %c0_8 = arith.constant 0 : index
    %c0_9 = arith.constant 0 : index
    %15 = vector.load %arg4[%c0_7, %c0_8, %c0_9] : memref<1x1x8xf32, #tpu.memory_space<vmem>>, vector<1x1x8xf32>
    tpu.vector_store %arg4[%c0_7, %c0_8, %c0_9], %14 {strides = array<i32>} : memref<1x1x8xf32, #tpu.memory_space<vmem>>, vector<1x1x8xf32>,
    return
  }
  func.func @transform_0(%arg0: i32) -> (i32, i32) {
    %c0_i32 = arith.constant 0 : i32
    %c0_i32_0 = arith.constant 0 : i32
    return %arg0, %c0_i32 : i32, i32
  }
  func.func @transform_1(%arg0: i32) -> (i32, i32) {
    %c0_i32 = arith.constant 0 : i32
    %c0_i32_0 = arith.constant 0 : i32
    return %arg0, %c0_i32 : i32, i32
  }
  func.func @transform_2(%arg0: i32) -> (i32, i32) {
    %c0_i32 = arith.constant 0 : i32
    %c0_i32_0 = arith.constant 0 : i32
    %c0_i32_1 = arith.constant 0 : i32
    return %c0_i32, %c0_i32_0 : i32, i32
  }
  func.func @transform_3(%arg0: i32) -> (i32, i32, i32) {
    %c0_i32 = arith.constant 0 : i32
    %c0_i32_0 = arith.constant 0 : i32
    %c0_i32_1 = arith.constant 0 : i32
    return %arg0, %c0_i32, %c0_i32_0 : i32, i32, i32
  }
}

</mosaic_0001>

<bundles_post_ra>
// kernel: tpu_custom_call.1
= control target key start
LH: loop header
LB: loop body
LE: loop exit
PB: predicated region body
PF: predicated region fallthrough
CT: control target
= control target key end

     0   :  { %v86_v1 = vmov 0   ;;  %s129_s0 = inlined_call_operand.vmem [shape: f32[8,8], index: 0, kind: input, shape index: {}]   ;;  %s130_s1 = inlined_call_operand.vmem [shape: f32[8,1], index: 1, kind: input, shape index: {}]   ;;  %s131_s2 = inlined_call_operand.vmem [shape: f32[1,8], index: 2, kind: input, shape index: {}]   ;;  %s132_s3 = inlined_call_operand.hbm [shape: f32[1,1,8], index: 3, kind: output, shape index: {}]  }
   0x1   :  { %v16_v0 = vld [vmem:[%s130_s1] sm:$0xff]  ;;  %61 = vset.pattern.permute.xlu0 %v86_v1 }
   0x2   :  { %8 = vsyncpa [#allocation3], 0  ;;  %20 = vperm.xlu0 %61, %v16_v0   ;;  %v58_v2 = vld [vmem:[%s131_s2] ss:$0 sm:$0xff]  ;;  %vm34_vm0 = vcmask 64512   ;;  %s87_s1 = smov [#allocation2]  }
   0x3   :  { %v15_v3 = vld [vmem:[%s129_s0] sm:$0xff]  ;;  %s50_s18 = sshll.u32 %s87_s1, 4  ;;  %vm42_vm1 = vcmask 57344   ;;  %s51_s18 = int_to_ptr.vmem [resolvable:$true] %s50_s18 }
   0x4   :  { %v31_v4 = vsub.f32 %v15_v3, %v58_v2  ;;  %s62_s0 = scalar_lea.vmem %s51_s18, 16  ;;  %s66_s2 = scalar_lea.vmem %s51_s18, 32 }
   0x5   :  { %p63_p0 = scmp.ne.s32.totalorder %s51_s18, %s62_s0  ;;  %p67_p1 = scmp.lt.s32.totalorder %s51_s18, %s51_s18 }
   0x6   :  { %v32_v7 = vmax.f32 %v31_v4, 0.0  ;;  %p68_p2 = scmp.lt.s32.totalorder %s66_s2, %s62_s0 }
   0x8   :  { %p69_p3 = por %p68_p2, %p67_p1 }
   0xa   :  { %p70_p4 = pnand %p69_p3, %p63_p0 }
  0x81   :  { %v21_v5 = vpop.permute.xlu0 %20 }
  0x82   :  { %v23_v6 = vsub.f32 %v15_v3, %v21_v5 }
  0x84   :  { %v24_v8 = vmax.f32 %v23_v6, 0.0 }
  0x86   :  { %v33_v9 = vadd.f32 %v32_v7, %v24_v8 }
  0x88   :  { %v35_v10 = vsel %vm34_vm0, %v33_v9, 0.0 }
  0x89   :  { %v36_v11 = vrot.slane %v35_v10, 4 }
  0x8b   :  { %v37_v12 = vadd.f32 %v36_v11, %v35_v10 }
  0x8d   :  { %v38_v13 = vrot.slane %v37_v12, 2 }
  0x8f   :  { %v39_v14 = vadd.f32 %v38_v13, %v37_v12 }
  0x91   :  { %v40_v15 = vrot.slane %v39_v14, 1 }
  0x93   :  { %v41_v16 = vadd.f32 %v40_v15, %v39_v14 }
  0x95   :  { %43 = vst.msk [vmem:[#allocation2] sm:$0x1] %vm42_vm1, %v41_v16 }
  0x96   :  { %73 = shalt.err (!%p70_p4)
}
  0x97   :  { %s74_s21 = scalar_lea.hbm %s132_s3, 16 }
  0x98   :  { %p75_p5 = scmp.ne.s32.totalorder %s132_s3, %s74_s21  ;;  %p78_p6 = scmp.lt.u32.totalorder %s74_s21, %s132_s3 }
  0x9a   :  { %p80_p7 = pnand %p78_p6, %p75_p5 }
  0x9c   :  { %83 = shalt.err (!%p80_p7)
}
  0x9d   :  { %53 = dma.vmem_to_hbm [thread:$0]  %s51_s18, 16, %s132_s3, [#allocation3]  }
  0x9e   :  { %84 = dma.done.wait [#allocation3], 16  }
  0x9f   :  { %85 = vsyncadd [#allocation3], 4294967280 }
  0xa0   :  { %57 = vsyncpa [#allocation3], 1 }

</bundles_post_ra>
